<compile_context>
chip_gen: v5e
topology: v5e:2x2
jax: 0.10.0
libtpu: 0.0.40
codegen_flags: <defaults>
</compile_context>

<pallas_src>
import jax
import jax.numpy as jnp
from jax import lax
from jax.experimental import pallas as pl
from jax.experimental.pallas import tpu as pltpu

COMPRESSED_WINDOW_SIZE = 2
EXPANSION_SIZE = 128
BYTES_PER_ENTRY = 8  # TODO(synk): constant not present in snippet; chosen synthetically.

_LANE = 128  # TPU lane width; inner sub-chunk size (bounds live ranges of h).


def _round_up(x, m):
    return (x + m - 1) // m * m


def _mlp_kernel(x_ref, w1t_ref, b1_ref, w2t_ref, b2_ref, o_ref):
    """relu(W2^T @ relu(W1^T @ x + b1) + b2) on a (f_in, n_tile) lane-dense block."""
    # Weights / biases are grid-invariant (constant index_map) -> read once, hoisted.
    w1t = w1t_ref[...]          # (f_hidden, f_in)
    b1 = b1_ref[...]            # (f_hidden, 1)
    w2t = w2t_ref[...]          # (f_out, f_hidden)
    b2 = b2_ref[...]            # (f_out, 1)

    n_tile = o_ref.shape[-1]
    n_chunks = n_tile // _LANE

    def body(c, carry):
        off = pl.multiple_of(c * _LANE, _LANE)
        x = x_ref[:, pl.ds(off, _LANE)]                                # (f_in, 128)
        h = jnp.dot(w1t, x, preferred_element_type=jnp.float32) + b1   # (f_hidden, 128)
        h = jnp.maximum(h, 0.0)
        y = jnp.dot(w2t, h, preferred_element_type=jnp.float32) + b2   # (f_out, 128)
        y = jnp.maximum(y, 0.0)
        o_ref[:, pl.ds(off, _LANE)] = y.astype(o_ref.dtype)
        return carry

    # Unrolled inner loop over 128-lane sub-chunks: keeps the f32 hidden (128,128)
    # in registers between the two matmuls and gives the scheduler full visibility.
    lax.fori_loop(0, n_chunks, body, None, unroll=True)


def compression_block_pallas(x, w1, b1, w2, b2, *, mode, n_tile=512):
    """x: (B, total). Returns (B, -1), matching the PyTorch module's forward."""
    if mode == "encode":
        f_in = BYTES_PER_ENTRY
    elif mode == "decode":
        f_in = COMPRESSED_WINDOW_SIZE
    else:
        raise Exception("expected encode / decode")

    batch_size = x.shape[0]
    x2 = x.reshape(batch_size, -1, f_in)        # (B, N, f_in)
    n_windows = x2.shape[1]
    rows = batch_size * n_windows

    f_hidden = w1.shape[1]
    f_out = w2.shape[1]

    # Lane tile: multiple of 128, clamped for small problems; pad the lane (row)
    # axis with zeros instead of asserting divisibility.  Padded columns compute
    # relu(bias) garbage which is sliced off below -- no in-kernel masking needed.
    n_tile = max(_LANE, min(n_tile, _round_up(rows, _LANE)))
    r_pad = _round_up(rows, n_tile)

    # Window axis -> lanes: present x as (f_in, r_pad); weights transposed.
    xt = x2.reshape(rows, f_in).T               # (f_in, rows)
    if r_pad != rows:
        xt = jnp.pad(xt, ((0, 0), (0, r_pad - rows)))
    w1t = w1.T                                  # (f_hidden, f_in)
    w2t = w2.T                                  # (f_out, f_hidden)
    b1c = b1.reshape(f_hidden, 1)
    b2c = b2.reshape(f_out, 1)

    grid = (r_pad // n_tile,)

    cost = pl.CostEstimate(
        flops=2 * r_pad * (f_in * f_hidden + f_hidden * f_out),
        transcendentals=0,
        bytes_accessed=4 * (r_pad * (f_in + f_out)
                            + f_in * f_hidden + f_hidden * f_out
                            + f_hidden + f_out),
    )

    out_t = pl.pallas_call(
        _mlp_kernel,
        out_shape=jax.ShapeDtypeStruct((f_out, r_pad), x.dtype),
        grid_spec=pltpu.PrefetchScalarGridSpec(
            num_scalar_prefetch=0,
            grid=grid,
            in_specs=[
                pl.BlockSpec((f_in, n_tile), lambda i: (0, i)),       # x^T tile (lane-dense)
                pl.BlockSpec((f_hidden, f_in), lambda i: (0, 0)),     # W1^T, resident
                pl.BlockSpec((f_hidden, 1), lambda i: (0, 0)),        # b1, resident
                pl.BlockSpec((f_out, f_hidden), lambda i: (0, 0)),    # W2^T, resident
                pl.BlockSpec((f_out, 1), lambda i: (0, 0)),           # b2, resident
            ],
            out_specs=pl.BlockSpec((f_out, n_tile), lambda i: (0, i)),  # lane-dense store
        ),
        compiler_params=pltpu.CompilerParams(
            dimension_semantics=("parallel",)),   # megacore split across v7x's 2 TCs
        cost_estimate=cost,
    )(xt, w1t, b1c, w2t, b2c)

    y = out_t[:, :rows].T                       # (rows, f_out)
    return y.reshape(batch_size, -1)


def init_params(key, mode):
    """Deterministic nn.Linear-style init: U(-1/sqrt(fan_in), 1/sqrt(fan_in))."""
    if mode == "encode":
        d0, d1, d2 = BYTES_PER_ENTRY, EXPANSION_SIZE, COMPRESSED_WINDOW_SIZE
    elif mode == "decode":
        d0, d1, d2 = COMPRESSED_WINDOW_SIZE, EXPANSION_SIZE, BYTES_PER_ENTRY
    else:
        raise Exception("expected encode / decode")
    k1, k2, k3, k4 = jax.random.split(key, 4)
    lim1 = 1.0 / jnp.sqrt(d0)
    lim2 = 1.0 / jnp.sqrt(d1)
    w1 = jax.random.uniform(k1, (d0, d1), jnp.float32, -lim1, lim1)
    b1 = jax.random.uniform(k2, (1, d1), jnp.float32, -lim1, lim1)
    w2 = jax.random.uniform(k3, (d1, d2), jnp.float32, -lim2, lim2)
    b2 = jax.random.uniform(k4, (1, d2), jnp.float32, -lim2, lim2)
    return w1, b1, w2, b2


def reference(x, w1, b1, w2, b2, *, mode):
    f_in = BYTES_PER_ENTRY if mode == "encode" else COMPRESSED_WINDOW_SIZE
    b = x.shape[0]
    xr = x.reshape(b, -1, f_in)
    h = jnp.maximum(xr @ w1 + b1, 0.0)
    y = jnp.maximum(h @ w2 + b2, 0.0)
    return y.reshape(b, -1)


if __name__ == "__main__":
    key = jax.random.PRNGKey(0)
    kx, kx2, kp_enc, kp_dec = jax.random.split(key, 4)

    batch = 2
    n_entries = 16  # entries per example

    # ---- encode path: x (2, 16*8) = (2, 128) ----
    x_enc = jax.random.normal(kx, (batch, n_entries * BYTES_PER_ENTRY), jnp.float32)
    w1e, b1e, w2e, b2e = init_params(kp_enc, "encode")
    y_enc = jax.block_until_ready(
        compression_block_pallas(x_enc, w1e, b1e, w2e, b2e, mode="encode"))
    ref_enc = reference(x_enc, w1e, b1e, w2e, b2e, mode="encode")
    assert y_enc.shape == (batch, n_entries * COMPRESSED_WINDOW_SIZE)
    assert jnp.allclose(y_enc, ref_enc, atol=2e-5, rtol=2e-5)

    # ---- decode path: x (2, 16*2) = (2, 32) ----
    x_dec = y_enc
    w1d, b1d, w2d, b2d = init_params(kp_dec, "decode")
    y_dec = jax.block_until_ready(
        compression_block_pallas(x_dec, w1d, b1d, w2d, b2d, mode="decode"))
    ref_dec = reference(x_dec, w1d, b1d, w2d, b2d, mode="decode")
    assert y_dec.shape == (batch, n_entries * BYTES_PER_ENTRY)
    assert jnp.allclose(y_dec, ref_dec, atol=2e-5, rtol=2e-5)

    # ---- larger shape: exercises multi-step grid + zero-padded tail tile ----
    batch2, n_entries2 = 4, 300          # rows = 1200 -> n_tile 512, grid of 3, 336 pad cols
    x_big = jax.random.normal(kx2, (batch2, n_entries2 * BYTES_PER_ENTRY), jnp.float32)
    y_big = jax.block_until_ready(
        compression_block_pallas(x_big, w1e, b1e, w2e, b2e, mode="encode"))
    ref_big = reference(x_big, w1e, b1e, w2e, b2e, mode="encode")
    assert y_big.shape == (batch2, n_entries2 * COMPRESSED_WINDOW_SIZE)
    assert jnp.allclose(y_big, ref_big, atol=2e-5, rtol=2e-5)

    print("KERNEL_OK")
</pallas_src>

<mosaic_0001>
module attributes {stable_mosaic.version = 11 : i64} {
  func.func @_mlp_kernel(%arg0: i32, %arg1: memref<8x128xf32, #tpu.memory_space<vmem>>, %arg2: memref<128x8xf32, #tpu.memory_space<vmem>>, %arg3: memref<128x1xf32, #tpu.memory_space<vmem>>, %arg4: memref<2x128xf32, #tpu.memory_space<vmem>>, %arg5: memref<2x1xf32, #tpu.memory_space<vmem>>, %arg6: memref<2x128xf32, #tpu.memory_space<vmem>>) attributes {dimension_semantics = [#tpu.dimension_semantics<parallel>], iteration_bounds = array<i64: 1>, scalar_prefetch = 0 : i64, scratch_operands = 0 : i64, tpu.core_type = #tpu.core_type<tc>, window_params = [{transform_indices = @transform_0, window_bounds = array<i64: 8, 128>}, {pipeline_mode = #tpu.pipeline_mode<synchronous>, transform_indices = @transform_1, window_bounds = array<i64: 128, 8>}, {pipeline_mode = #tpu.pipeline_mode<synchronous>, transform_indices = @transform_2, window_bounds = array<i64: 128, 1>}, {pipeline_mode = #tpu.pipeline_mode<synchronous>, transform_indices = @transform_3, window_bounds = array<i64: 2, 128>}, {pipeline_mode = #tpu.pipeline_mode<synchronous>, transform_indices = @transform_4, window_bounds = array<i64: 2, 1>}, {transform_indices = @transform_5, window_bounds = array<i64: 2, 128>}]} {
    %c0 = arith.constant 0 : index
    %c0_0 = arith.constant 0 : index
    %0 = vector.load %arg2[%c0, %c0_0] : memref<128x8xf32, #tpu.memory_space<vmem>>, vector<128x8xf32>
    %c0_1 = arith.constant 0 : index
    %c0_2 = arith.constant 0 : index
    %1 = vector.load %arg3[%c0_1, %c0_2] : memref<128x1xf32, #tpu.memory_space<vmem>>, vector<128x1xf32>
    %c0_3 = arith.constant 0 : index
    %c0_4 = arith.constant 0 : index
    %2 = vector.load %arg4[%c0_3, %c0_4] : memref<2x128xf32, #tpu.memory_space<vmem>>, vector<2x128xf32>
    %c0_5 = arith.constant 0 : index
    %c0_6 = arith.constant 0 : index
    %3 = vector.load %arg5[%c0_5, %c0_6] : memref<2x1xf32, #tpu.memory_space<vmem>>, vector<2x1xf32>
    %c0_i32 = arith.constant 0 : i32
    %c128_i32 = arith.constant 128 : i32
    %4 = arith.muli %c0_i32, %c128_i32 : i32
    %5 = tpu.assume_multiple %4, 128 : i32
    %c0_7 = arith.constant 0 : index
    %6 = arith.index_cast %5 : i32 to index
    %7 = vector.load %arg1[%c0_7, %6] : memref<8x128xf32, #tpu.memory_space<vmem>>, vector<8x128xf32>
    %cst = arith.constant dense<0.000000e+00> : vector<128x128xf32>
    %8 = tpu.matmul %0, %7, %cst {dimension_numbers = #tpu.dot_dimension_numbers<[1], [0], [0], [1], [0, 0, 1, 1], [], []>} : vector<128x8xf32>, vector<8x128xf32>, vector<128x128xf32> -> vector<128x128xf32>
    %9 = vector.broadcast %1 : vector<128x1xf32> to vector<128x128xf32>
    %10 = arith.addf %8, %9 : vector<128x128xf32>
    %cst_8 = arith.constant 0.000000e+00 : f32
    %11 = vector.broadcast %cst_8 : f32 to vector<128x128xf32>
    %12 = arith.maximumf %10, %11 : vector<128x128xf32>
    %cst_9 = arith.constant dense<0.000000e+00> : vector<2x128xf32>
    %13 = tpu.matmul %2, %12, %cst_9 {dimension_numbers = #tpu.dot_dimension_numbers<[1], [0], [0], [1], [0, 0, 1, 1], [], []>} : vector<2x128xf32>, vector<128x128xf32>, vector<2x128xf32> -> vector<2x128xf32>
    %14 = vector.broadcast %3 : vector<2x1xf32> to vector<2x128xf32>
    %15 = arith.addf %13, %14 : vector<2x128xf32>
    %cst_10 = arith.constant 0.000000e+00 : f32
    %16 = vector.broadcast %cst_10 : f32 to vector<2x128xf32>
    %17 = arith.maximumf %15, %16 : vector<2x128xf32>
    %c0_11 = arith.constant 0 : index
    %18 = arith.index_cast %5 : i32 to index
    %19 = vector.load %arg6[%c0_11, %18] : memref<2x128xf32, #tpu.memory_space<vmem>>, vector<2x128xf32>
    tpu.vector_store %arg6[%c0_11, %18], %17 {strides = array<i32>} : memref<2x128xf32, #tpu.memory_space<vmem>>, vector<2x128xf32>,
    %c1_i32 = arith.constant 1 : i32
    return
  }
  func.func @transform_0(%arg0: i32) -> (i32, i32) {
    %c0_i32 = arith.constant 0 : i32
    %c0_i32_0 = arith.constant 0 : i32
    return %c0_i32, %arg0 : i32, i32
  }
  func.func @transform_1(%arg0: i32) -> (i32, i32) {
    %c0_i32 = arith.constant 0 : i32
    %c0_i32_0 = arith.constant 0 : i32
    %c0_i32_1 = arith.constant 0 : i32
    return %c0_i32, %c0_i32_0 : i32, i32
  }
  func.func @transform_2(%arg0: i32) -> (i32, i32) {
    %c0_i32 = arith.constant 0 : i32
    %c0_i32_0 = arith.constant 0 : i32
    %c0_i32_1 = arith.constant 0 : i32
    return %c0_i32, %c0_i32_0 : i32, i32
  }
  func.func @transform_3(%arg0: i32) -> (i32, i32) {
    %c0_i32 = arith.constant 0 : i32
    %c0_i32_0 = arith.constant 0 : i32
    %c0_i32_1 = arith.constant 0 : i32
    return %c0_i32, %c0_i32_0 : i32, i32
  }
  func.func @transform_4(%arg0: i32) -> (i32, i32) {
    %c0_i32 = arith.constant 0 : i32
    %c0_i32_0 = arith.constant 0 : i32
    %c0_i32_1 = arith.constant 0 : i32
    return %c0_i32, %c0_i32_0 : i32, i32
  }
  func.func @transform_5(%arg0: i32) -> (i32, i32) {
    %c0_i32 = arith.constant 0 : i32
    %c0_i32_0 = arith.constant 0 : i32
    return %c0_i32, %arg0 : i32, i32
  }
}

</mosaic_0001>

<bundles_post_ra>
// kernel: tpu_custom_call.1
= control target key start
LH: loop header
LB: loop body
LE: loop exit
PB: predicated region body
PF: predicated region fallthrough
CT: control target
= control target key end

     0   :  { %vm136_vm0 = vcmask 64512   ;;  %v358_v3 = vmov 0   ;;  %s520_s0 = inlined_call_operand.vmem [shape: f32[8,128], index: 0, kind: input, shape index: {}]   ;;  %s521_s1 = inlined_call_operand.vmem [shape: f32[128,8], index: 1, kind: input, shape index: {}]   ;;  %s522_s2 = inlined_call_operand.vmem [shape: f32[128,1], index: 2, kind: input, shape index: {}]   ;;  %s523_s3 = inlined_call_operand.vmem [shape: f32[2,128], index: 3, kind: input, shape index: {}]   ;;  %s524_s4 = inlined_call_operand.vmem [shape: f32[2,1], index: 4, kind: input, shape index: {}]   ;;  %s525_s5 = inlined_call_operand.hbm [shape: f32[2,128], index: 5, kind: output, shape index: {}]  }
   0x1   :  { %v55_v0 = vld [vmem:[%s520_s0] sm:$0xff]  ;;  %v52_v1 = vld [vmem:[%s522_s2 + $0x78] sm:$0xff]  ;;  %329 = vset.pattern.permute.xlu0 %v358_v3  ;;  %v27_v4 = vld [vmem:[%s521_s1 + $0x30] sm:$0xff]  ;;  %330 = vset.pattern.permute.xlu1 %v358_v3 }
   0x2   :  { %v21_v2 = vld [vmem:[%s521_s1] sm:$0xff]  ;;  %200 = vmatpush.msra.mxu0 %v55_v0  ;;  %325 = vmatpush.msra.mxu2 %v55_v0  ;;  %v50_v6 = vld [vmem:[%s522_s2 + $0x68] sm:$0xff]  ;;  %v48_v7 = vld [vmem:[%s522_s2 + $0x58] sm:$0xff] }
   0x3   :  { %v33_v5 = vld [vmem:[%s521_s1 + $0x60] sm:$0xff]  ;;  %326 = vmatpush.msra.mxu3 %v55_v0  ;;  %133 = vperm.xlu0 %329, %v52_v1   ;;  %v51_v8 = vld [vmem:[%s522_s2 + $0x70] sm:$0xff]  ;;  %v22_v9 = vld [vmem:[%s521_s1 + $0x8] sm:$0xff] }
   0x4   :  { %309 = vmatmul.msk.f32.vlgmr.msra.gmra.mxu0 %vm136_vm0, %v21_v2  ;;  %315 = vmatmul.msk.f32.vlgmr.msra.gmra.mxu2 %vm136_vm0, %v27_v4  ;;  %v28_v10 = vld [vmem:[%s521_s1 + $0x38] sm:$0xff]  ;;  %v34_v11 = vld [vmem:[%s521_s1 + $0x68] sm:$0xff] }
   0x5   :  { %321 = vmatmul.msk.f32.vlgmr.msra.gmra.mxu3 %vm136_vm0, %v33_v5  ;;  %331 = vset.pattern.permute.xlu2 %v358_v3 }
   0x6   :  { %123 = vperm.xlu1 %330, %v50_v6   ;;  %113 = vperm.xlu2 %331, %v48_v7  }
   0x7   :  { %10 = vsyncpa [#allocation3], 0  ;;  %v49_v12 = vld [vmem:[%s522_s2 + $0x60] sm:$0xff]  ;;  %v47_v13 = vld [vmem:[%s522_s2 + $0x50] sm:$0xff]  ;;  %s300_s11 = sshll.u32 %s525_s5, 4  ;;  %s301_s11 = int_to_ptr.hbm [resolvable:$true] %s300_s11 }
   0x8   :  { %v46_v14 = vld [vmem:[%s522_s2 + $0x48] sm:$0xff]  ;;  %v23_v15 = vld [vmem:[%s521_s1 + $0x10] sm:$0xff]  ;;  %v29_v16 = vld [vmem:[%s521_s1 + $0x40] sm:$0xff] }
   0x9   :  { %v35_v17 = vld [vmem:[%s521_s1 + $0x70] sm:$0xff]  ;;  %v45_v18 = vld [vmem:[%s522_s2 + $0x40] sm:$0xff]  ;;  %v44_v19 = vld [vmem:[%s522_s2 + $0x38] sm:$0xff] }
   0xa   :  { %v43_v20 = vld [vmem:[%s522_s2 + $0x30] sm:$0xff]  ;;  %v24_v21 = vld [vmem:[%s521_s1 + $0x18] sm:$0xff]  ;;  %v30_v22 = vld [vmem:[%s521_s1 + $0x48] sm:$0xff] }
   0xb   :  { %128 = vperm.xlu0 %329, %v51_v8   ;;  %v36_v23 = vld [vmem:[%s521_s1 + $0x78] sm:$0xff]  ;;  %v42_v24 = vld [vmem:[%s522_s2 + $0x28] sm:$0xff]  ;;  %v41_v25 = vld [vmem:[%s522_s2 + $0x20] sm:$0xff] }
   0xc   :  { %310 = vmatmul.msk.f32.gmra.mxu0 %vm136_vm0, %v22_v9  ;;  %316 = vmatmul.msk.f32.gmra.mxu2 %vm136_vm0, %v28_v10  ;;  %v40_v26 = vld [vmem:[%s522_s2 + $0x18] sm:$0xff]  ;;  %v25_v27 = vld [vmem:[%s521_s1 + $0x20] sm:$0xff]  ;;  %v31_v28 = vld [vmem:[%s521_s1 + $0x50] sm:$0xff] }
   0xd   :  { %322 = vmatmul.msk.f32.gmra.mxu3 %vm136_vm0, %v34_v11  ;;  %v39_v29 = vld [vmem:[%s522_s2 + $0x10] sm:$0xff]  ;;  %v38_v30 = vld [vmem:[%s522_s2 + $0x8] sm:$0xff]  ;;  %v37_v31 = vld [vmem:[%s522_s2] sm:$0xff] }
   0xe   :  { %118 = vperm.xlu1 %330, %v49_v12   ;;  %108 = vperm.xlu2 %331, %v47_v13   ;;  %v26_v32 = vld [vmem:[%s521_s1 + $0x28] sm:$0xff]  ;;  %v32_v33 = vld [vmem:[%s521_s1 + $0x58] sm:$0xff]  ;;  %v54_v34 = vld [vmem:[%s524_s4] sm:$0x3]  ;;  %s359_s4 = smov [#allocation2]  }
   0xf   :  { %s298_s8 = sshll.u32 %s359_s4, 4  ;;  %s299_s8 = int_to_ptr.vmem [resolvable:$true] %s298_s8 }
  0x13   :  { %103 = vperm.xlu0 %329, %v46_v14  }
  0x14   :  { %311 = vmatmul.msk.f32.gmra.mxu0 %vm136_vm0, %v23_v15  ;;  %317 = vmatmul.msk.f32.gmra.mxu2 %vm136_vm0, %v29_v16 }
  0x15   :  { %323 = vmatmul.msk.f32.gmra.mxu3 %vm136_vm0, %v35_v17 }
  0x16   :  { %98 = vperm.xlu1 %330, %v45_v18   ;;  %93 = vperm.xlu2 %331, %v44_v19  }
  0x1b   :  { %88 = vperm.xlu0 %329, %v43_v20  }
  0x1c   :  { %312 = vmatmul.msk.f32.gmra.mxu0 %vm136_vm0, %v24_v21  ;;  %318 = vmatmul.msk.f32.gmra.mxu2 %vm136_vm0, %v30_v22 }
  0x1d   :  { %324 = vmatmul.msk.f32.gmra.mxu3 %vm136_vm0, %v36_v23 }
  0x1e   :  { %83 = vperm.xlu1 %330, %v42_v24   ;;  %78 = vperm.xlu2 %331, %v41_v25  }
  0x23   :  { %73 = vperm.xlu0 %329, %v40_v26  }
  0x24   :  { %313 = vmatmul.msk.f32.gmra.mxu0 %vm136_vm0, %v25_v27  ;;  %319 = vmatmul.msk.f32.gmra.mxu2 %vm136_vm0, %v31_v28 }
  0x26   :  { %68 = vperm.xlu1 %330, %v39_v29   ;;  %63 = vperm.xlu2 %331, %v38_v30  }
  0x2b   :  { %58 = vperm.xlu0 %329, %v37_v31  }
  0x2c   :  { %314 = vmatmul.msk.f32.gmra.mxu0 %vm136_vm0, %v26_v32  ;;  %320 = vmatmul.msk.f32.gmra.mxu2 %vm136_vm0, %v32_v33 }
  0x2e   :  { %268 = vperm.xlu1 %330, %v54_v34  }
  0x60   :  { %v114_v43 = vpop.permute.xlu2 %113 }
  0x68   :  { %v109_v53 = vpop.permute.xlu2 %108 }
  0x70   :  { %v94_v0 = vpop.permute.xlu2 %93 }
  0x75   :  { %v134_v38 = vpop.permute.xlu0 %133 }
  0x78   :  { %v124_v42 = vpop.permute.xlu1 %123  ;;  %v79_v11 = vpop.permute.xlu2 %78 }
  0x7d   :  { %v129_v46 = vpop.permute.xlu0 %128 }
  0x80   :  { %v119_v52 = vpop.permute.xlu1 %118  ;;  %v64_v25 = vpop.permute.xlu2 %63 }
  0x81   :  { %v508_v35 = vpop.f32.mrf.mxu0 }
  0x85   :  { %v104_v56 = vpop.permute.xlu0 %103 }
  0x87   :  { %v220_v36 = vpop.f32.mrf.mxu2 }
  0x88   :  { %v238_v37 = vpop.f32.mrf.mxu3  ;;  %v99_v63 = vpop.permute.xlu1 %98 }
  0x89   :  { %v510_v39 = vpop.f32.mrf.mxu0  ;;  %v239_v58 = vadd.f32 %v238_v37, %v119_v52 }
  0x8a   :  { %v206_v30 = vadd.f32 %v510_v39, %v64_v25 }
  0x8b   :  { %v262_v62 = vmax.f32 %v239_v58, 0.0 }
  0x8c   :  { %v251_v33 = vmax.f32 %v206_v30, 0.0 }
  0x8d   :  { %v89_v1 = vpop.permute.xlu0 %88 }
  0x8e   :  { %v221_v16 = vadd.f32 %v220_v36, %v89_v1  ;;  %v53_v36 = vld [vmem:[%s523_s3] sm:$0x3] }
  0x8f   :  { %v223_v40 = vpop.f32.mrf.mxu2 }
  0x90   :  { %v241_v41 = vpop.f32.mrf.mxu3  ;;  %v84_v10 = vpop.permute.xlu1 %83  ;;  %v224_v12 = vadd.f32 %v223_v40, %v94_v0  ;;  %v256_v20 = vmax.f32 %v221_v16, 0.0 }
  0x91   :  { %v208_v47 = vpop.f32.mrf.mxu0  ;;  %v242_v54 = vadd.f32 %v241_v41, %v124_v42 }
  0x92   :  { %v257_v18 = vmax.f32 %v224_v12, 0.0 }
  0x93   :  { %v263_v60 = vmax.f32 %v242_v54, 0.0 }
  0x95   :  { %v74_v14 = vpop.permute.xlu0 %73 }
  0x97   :  { %v226_v44 = vpop.f32.mrf.mxu2 }
  0x98   :  { %v244_v45 = vpop.f32.mrf.mxu3  ;;  %v227_v8 = vadd.f32 %v226_v44, %v99_v63  ;;  %v69_v24 = vpop.permute.xlu1 %68 }
  0x99   :  { %v245_v50 = vadd.f32 %v244_v45, %v129_v46  ;;  %v211_v57 = vpop.f32.mrf.mxu0  ;;  %v209_v26 = vadd.f32 %v208_v47, %v69_v24 }
  0x9a   :  { %v258_v17 = vmax.f32 %v227_v8, 0.0  ;;  %v212_v22 = vadd.f32 %v211_v57, %v74_v14 }
  0x9b   :  { %v264_v59 = vmax.f32 %v245_v50, 0.0  ;;  %v252_v31 = vmax.f32 %v209_v26, 0.0 }
  0x9c   :  { %v253_v29 = vmax.f32 %v212_v22, 0.0 }
  0x9d   :  { %v59_v28 = vpop.permute.xlu0 %58 }
  0x9e   :  { %v203_v32 = vadd.f32 %v508_v35, %v59_v28 }
  0x9f   :  { %v229_v48 = vpop.f32.mrf.mxu2 }
  0xa0   :  { %v247_v49 = vpop.f32.mrf.mxu3  ;;  %v230_v6 = vadd.f32 %v229_v48, %v104_v56  ;;  %v250_v34 = vmax.f32 %v203_v32, 0.0  ;;  %v269_v37 = vpop.permute.xlu1 %268 }
  0xa1   :  { %v248_v51 = vadd.f32 %v247_v49, %v134_v38  ;;  %v214_v2 = vpop.f32.mrf.mxu0 }
  0xa2   :  { %v259_v13 = vmax.f32 %v230_v6, 0.0  ;;  %v215_v21 = vadd.f32 %v214_v2, %v79_v11 }
  0xa3   :  { %v265_v55 = vmax.f32 %v248_v51, 0.0 }
  0xa4   :  { %v254_v27 = vmax.f32 %v215_v21, 0.0 }
  0xa5   :  { %271 = vmatpush.msra.mxu1 %v265_v55 }
  0xa7   :  { %272 = vmatpush.msra.mxu1 %v264_v59  ;;  %v232_v61 = vpop.f32.mrf.mxu2 }
  0xa8   :  { %v233_v4 = vadd.f32 %v232_v61, %v109_v53 }
  0xa9   :  { %273 = vmatpush.msra.mxu1 %v263_v60  ;;  %v217_v15 = vpop.f32.mrf.mxu0 }
  0xaa   :  { %v260_v9 = vmax.f32 %v233_v4, 0.0  ;;  %v218_v19 = vadd.f32 %v217_v15, %v84_v10 }
  0xab   :  { %274 = vmatpush.msra.mxu1 %v262_v62 }
  0xac   :  { %v255_v23 = vmax.f32 %v218_v19, 0.0 }
  0xaf   :  { %v235_v3 = vpop.f32.mrf.mxu2 }
  0xb0   :  { %v236_v5 = vadd.f32 %v235_v3, %v114_v43 }
  0xb2   :  { %v261_v7 = vmax.f32 %v236_v5, 0.0 }
  0xb4   :  { %275 = vmatpush.msra.mxu1 %v261_v7 }
  0xb6   :  { %276 = vmatpush.msra.mxu1 %v260_v9 }
  0xb8   :  { %277 = vmatpush.msra.mxu1 %v259_v13 }
  0xba   :  { %278 = vmatpush.msra.mxu1 %v258_v17 }
  0xbc   :  { %279 = vmatpush.msra.mxu1 %v257_v18 }
  0xbe   :  { %280 = vmatpush.msra.mxu1 %v256_v20 }
  0xc0   :  { %281 = vmatpush.msra.mxu1 %v255_v23 }
  0xc2   :  { %282 = vmatpush.msra.mxu1 %v254_v27 }
  0xc4   :  { %283 = vmatpush.msra.mxu1 %v253_v29 }
  0xc6   :  { %284 = vmatpush.msra.mxu1 %v252_v31 }
  0xc8   :  { %285 = vmatpush.msra.mxu1 %v251_v33 }
  0xca   :  { %286 = vmatpush.msra.mxu1 %v250_v34 }
  0xcb   :  { %287 = vmatmul.f32.vlgmr.msra.gmra.mxu1 %v53_v36 }
 0x148   :  { %v288_v38 = vpop.f32.mrf.mxu1 }
 0x149   :  { %v289_v35 = vadd.f32 %v288_v38, %v269_v37 }
 0x14b   :  { %v291_v39 = vmax.f32 %v289_v35, 0.0 }
 0x14d   :  { %292 = vst [vmem:[#allocation2] sm:$0x3] %v291_v39 }
 0x14e   :  { %303 = dma.vmem_to_hbm [thread:$0]  %s299_s8, 32, %s301_s11, [#allocation3]  }
 0x14f   :  { %356 = dma.done.wait [#allocation3], 32  }
 0x150   :  { %357 = vsyncadd [#allocation3], 4294967264 }
 0x151   :  { %308 = vsyncpa [#allocation3], 1 }

</bundles_post_ra>
